<compile_context>
chip_gen: v7x
topology: tpu7x:2x2x1
jax: 0.10.0
libtpu: 0.0.40
codegen_flags: <defaults>
</compile_context>

<pallas_src>
import functools

import jax
import jax.numpy as jnp
from jax import lax
from jax.experimental import pallas as pl
from jax.experimental.pallas import tpu as pltpu


def _round_up(n, m):
    return ((n + m - 1) // m) * m


# -----------------------------------------------------------------------------
# Fused single-pass kernel: whole image(s) of a batch tile resident in VMEM.
# -----------------------------------------------------------------------------
def _se_fused_kernel(x_ref, w1_ref, w2_ref, o_ref, *, inv_hw):
    # x_ref: (Bt, C, HW)  w1_ref: (Cr, C)  w2_ref: (Cr, C) [= w2.T]  o_ref: (Bt, C, HW)

    # Squeeze: global average pool over the spatial (lane) axis, f32 accumulate.
    pooled = jnp.sum(x_ref[...], axis=-1, dtype=jnp.float32) * inv_hw         # (Bt, C)

    # Excitation FC1 (bias-free) + LeakyReLU(0.01).  Weights stay lane-dense in
    # C and in their own dtype; f32 accumulation via preferred_element_type.
    h = lax.dot_general(pooled.astype(w1_ref.dtype), w1_ref[...],
                        dimension_numbers=(((1,), (1,)), ((), ())),
                        preferred_element_type=jnp.float32,
                        precision=lax.Precision.HIGHEST)                      # (Bt, Cr)
    h = jnp.where(h >= 0, h, 0.01 * h)

    # FC2 (bias-free) + sigmoid gate.
    s = lax.dot_general(h.astype(w2_ref.dtype), w2_ref[...],
                        dimension_numbers=(((1,), (0,)), ((), ())),
                        preferred_element_type=jnp.float32,
                        precision=lax.Precision.HIGHEST)                      # (Bt, C)
    s = jax.nn.sigmoid(s)

    # Scale: re-read x_ref (no full-tile f32 value kept live across the FC
    # chain) and multiply/store in the input dtype.
    o_ref[...] = x_ref[...] * s[:, :, None].astype(o_ref.dtype)


# -----------------------------------------------------------------------------
# HW-tiled two-pass fallback (a single image does not fit the VMEM budget).
# -----------------------------------------------------------------------------
def _se_pool_kernel(x_ref, sum_ref, *, hw, thw):
    # x_ref: (1, C, Thw)   sum_ref: (1, C, 1) f32, resident across the HW axis
    h_idx = pl.program_id(1)

    @pl.when(h_idx == 0)
    def _():
        sum_ref[...] = jnp.zeros_like(sum_ref)

    # Mask the ragged lane edge of the last HW tile before accumulating.
    lane = h_idx * thw + lax.broadcasted_iota(jnp.int32, x_ref.shape, 2)
    xv = jnp.where(lane < hw, x_ref[...], 0)
    sum_ref[...] += jnp.sum(xv, axis=-1, dtype=jnp.float32)[:, :, None]


def _se_scale_kernel(x_ref, s_ref, o_ref):
    # x_ref: (1, C, Thw)   s_ref: (1, C, 1)   o_ref: (1, C, Thw)
    o_ref[...] = (x_ref[...] * s_ref[...].astype(x_ref.dtype)).astype(o_ref.dtype)


# -----------------------------------------------------------------------------
# Wrapper
# -----------------------------------------------------------------------------
def se_block(x, w1, w2, *, pipeline_budget_bytes=None):
    """SEBlock forward.

    x : (B, C, H, W)
    w1: (C//r, C)  -- torch nn.Linear(C, C//r, bias=False).weight
    w2: (C, C//r)  -- torch nn.Linear(C//r, C, bias=False).weight
    """
    B, C, H, W = x.shape
    Cr = w1.shape[0]
    HW = H * W
    x_flat = x.reshape(B, C, HW)            # contiguous reshape: no extra HBM pass

    itemsize = jnp.dtype(x.dtype).itemsize
    sublane = 8 * max(1, 4 // itemsize)                    # 8 for f32, 16 for bf16
    HW_pad = _round_up(HW, 128)
    C_pad = _round_up(C, sublane)
    bytes_per_image = C_pad * HW_pad * itemsize            # physical VMEM footprint

    # Generation-aware VMEM pipeline budget: ~72% of physical capacity, capped
    # at 96 MiB (v7x 64 MiB phys -> ~46 MiB, v5e/v6e 128 MiB phys -> ~92 MiB).
    if pipeline_budget_bytes is None:
        vmem_cap = 64 << 20                                # conservative default (v7x)
        try:
            vmem_cap = int(pltpu.get_tpu_info().vmem_capacity_bytes)
        except Exception:
            pass
        pipeline_budget_bytes = min(int(0.72 * vmem_cap), 96 << 20)
    vmem_limit = int(max(16 << 20, pipeline_budget_bytes))

    w_itemsize = jnp.dtype(w1.dtype).itemsize
    w_sublane = 8 * max(1, 4 // w_itemsize)
    weight_bytes = 2 * 2 * _round_up(Cr, w_sublane) * _round_up(C, 128) * w_itemsize
    tile_budget = pipeline_budget_bytes - weight_bytes - (2 << 20)
    max_bt = tile_budget // (4 * bytes_per_image) if tile_budget > 0 else 0

    if max_bt >= 1:
        # ---------------- fused single-pass path ----------------------------
        if B >= 4:
            Bt = min(max_bt, B // 4)       # >= 4 grid steps (>= 2 per v7x TC)
        elif B >= 2:
            Bt = min(max_bt, B // 2)       # >= 2 grid steps
        else:
            Bt = 1
        Bt = int(max(1, min(Bt, B)))
        grid = (pl.cdiv(B, Bt),)           # ragged last batch block is fine

        kernel = functools.partial(_se_fused_kernel, inv_hw=1.0 / HW)
        out_flat = pl.pallas_call(
            kernel,
            out_shape=jax.ShapeDtypeStruct((B, C, HW), x.dtype),
            grid_spec=pltpu.PrefetchScalarGridSpec(
                num_scalar_prefetch=0,
                grid=grid,
                in_specs=[
                    # Last two block dims equal the full array dims, so no
                    # wrapper-side padding is needed; Mosaic masks the edges.
                    pl.BlockSpec((Bt, C, HW), lambda b: (b, 0, 0)),
                    pl.BlockSpec((Cr, C), lambda b: (0, 0)),
                    pl.BlockSpec((Cr, C), lambda b: (0, 0)),
                ],
                out_specs=pl.BlockSpec((Bt, C, HW), lambda b: (b, 0, 0)),
            ),
            compiler_params=pltpu.CompilerParams(
                dimension_semantics=("parallel",),
                vmem_limit_bytes=vmem_limit),
        )(x_flat, w1, w2.T)
        return out_flat.reshape(B, C, H, W)

    # ---------------- HW-tiled two-pass fallback ----------------------------
    # Pass 1: HW-tiled pooling (f32 sums).  Pass 2 (wrapper): tiny FC gate in
    # plain JAX.  Pass 3: HW-tiled scale.
    Thw = 128
    if tile_budget > 0:
        Thw = max(128, (tile_budget // (4 * C_pad * itemsize)) // 128 * 128)
    Thw = int(min(Thw, HW_pad))
    n_hw = pl.cdiv(HW, Thw)
    grid = (B, n_hw)

    sums = pl.pallas_call(
        functools.partial(_se_pool_kernel, hw=HW, thw=Thw),
        out_shape=jax.ShapeDtypeStruct((B, C, 1), jnp.float32),
        grid_spec=pltpu.PrefetchScalarGridSpec(
            num_scalar_prefetch=0,
            grid=grid,
            in_specs=[pl.BlockSpec((1, C, Thw), lambda b, h: (b, 0, h))],
            out_specs=pl.BlockSpec((1, C, 1), lambda b, h: (b, 0, 0)),
        ),
        compiler_params=pltpu.CompilerParams(
            dimension_semantics=("parallel", "arbitrary"),
            vmem_limit_bytes=vmem_limit),
    )(x_flat)

    pooled = sums[:, :, 0] * (1.0 / HW)                                       # (B, C) f32
    h = jnp.dot(pooled, w1.T.astype(jnp.float32), precision=lax.Precision.HIGHEST)
    h = jnp.where(h >= 0, h, 0.01 * h)                                        # LeakyReLU(0.01)
    s = jax.nn.sigmoid(jnp.dot(h, w2.T.astype(jnp.float32),
                               precision=lax.Precision.HIGHEST))              # (B, C)
    s = s.reshape(B, C, 1)

    out_flat = pl.pallas_call(
        _se_scale_kernel,
        out_shape=jax.ShapeDtypeStruct((B, C, HW), x.dtype),
        grid_spec=pltpu.PrefetchScalarGridSpec(
            num_scalar_prefetch=0,
            grid=grid,
            in_specs=[pl.BlockSpec((1, C, Thw), lambda b, h: (b, 0, h)),
                      pl.BlockSpec((1, C, 1), lambda b, h: (b, 0, 0))],
            out_specs=pl.BlockSpec((1, C, Thw), lambda b, h: (b, 0, h)),
        ),
        compiler_params=pltpu.CompilerParams(
            dimension_semantics=("parallel", "parallel"),
            vmem_limit_bytes=vmem_limit),
    )(x_flat, s)
    return out_flat.reshape(B, C, H, W)


def se_block_ref(x, w1, w2):
    """Pure-JAX reference matching the PyTorch forward (weights in torch layout)."""
    pooled = jnp.mean(x, axis=(2, 3))                     # (B, C)
    h = pooled @ w1.T
    h = jnp.where(h >= 0, h, 0.01 * h)                    # nn.LeakyReLU() default slope
    s = jax.nn.sigmoid(h @ w2.T)
    return x * s[:, :, None, None]


if __name__ == "__main__":
    # Full-precision f32 matmuls everywhere (reference included) so the check
    # is not polluted by default bf16 MXU passes.
    jax.config.update("jax_default_matmul_precision", "highest")

    def run_case(name, key, B, C, H, W, reduction, **kwargs):
        Cr = max(1, C // reduction)
        kx, k1, k2 = jax.random.split(key, 3)
        x = jax.random.normal(kx, (B, C, H, W), dtype=jnp.float32)
        # PyTorch weight layouts:
        w1 = jax.random.normal(k1, (Cr, C), dtype=jnp.float32) * 0.1  # Linear(C, Cr).weight
        w2 = jax.random.normal(k2, (C, Cr), dtype=jnp.float32) * 0.1  # Linear(Cr, C).weight

        out = jax.block_until_ready(se_block(x, w1, w2, **kwargs))
        ref = se_block_ref(x, w1, w2)
        assert out.shape == (B, C, H, W), name
        assert jnp.allclose(out, ref, atol=2e-5, rtol=2e-5), f"mismatch vs reference: {name}"

    k0, k1, k2 = jax.random.split(jax.random.PRNGKey(0), 3)
    # Fused path, tile-aligned spatial dims.
    run_case("fused_aligned", k0, B=2, C=32, H=16, W=16, reduction=16)
    # Fused path, unaligned C and H*W (exercises no-pad ragged-edge masking).
    run_case("fused_ragged", k1, B=3, C=20, H=7, W=7, reduction=4)
    # Forced HW-tiled two-pass fallback (tiny budget), ragged last HW tile.
    run_case("two_pass", k2, B=2, C=32, H=12, W=12, reduction=16,
             pipeline_budget_bytes=1 << 20)

    print("KERNEL_OK")
</pallas_src>

<mosaic_0001>
module attributes {stable_mosaic.version = 11 : i64} {
  func.func @_se_fused_kernel(%arg0: i32, %arg1: memref<1x32x256xf32, #tpu.memory_space<vmem>>, %arg2: memref<2x32xf32, #tpu.memory_space<vmem>>, %arg3: memref<2x32xf32, #tpu.memory_space<vmem>>, %arg4: memref<1x32x256xf32, #tpu.memory_space<vmem>>) attributes {dimension_semantics = [#tpu.dimension_semantics<parallel>], iteration_bounds = array<i64: 2>, scalar_prefetch = 0 : i64, scratch_operands = 0 : i64, tpu.core_type = #tpu.core_type<tc>, window_params = [{transform_indices = @transform_0, window_bounds = array<i64: 1, 32, 256>}, {pipeline_mode = #tpu.pipeline_mode<synchronous>, transform_indices = @transform_1, window_bounds = array<i64: 2, 32>}, {pipeline_mode = #tpu.pipeline_mode<synchronous>, transform_indices = @transform_2, window_bounds = array<i64: 2, 32>}, {transform_indices = @transform_3, window_bounds = array<i64: 1, 32, 256>}]} {
    %c0 = arith.constant 0 : index
    %c0_0 = arith.constant 0 : index
    %c0_1 = arith.constant 0 : index
    %0 = vector.load %arg1[%c0, %c0_0, %c0_1] : memref<1x32x256xf32, #tpu.memory_space<vmem>>, vector<1x32x256xf32>
    %cst = arith.constant dense<0.000000e+00> : vector<1x32xf32>
    %1 = vector.multi_reduction <add>, %0, %cst [2] : vector<1x32x256xf32> to vector<1x32xf32>
    %cst_2 = arith.constant 3.906250e-03 : f32
    %2 = vector.broadcast %cst_2 : f32 to vector<1x32xf32>
    %3 = arith.mulf %1, %2 : vector<1x32xf32>
    %c0_3 = arith.constant 0 : index
    %c0_4 = arith.constant 0 : index
    %4 = vector.load %arg2[%c0_3, %c0_4] : memref<2x32xf32, #tpu.memory_space<vmem>>, vector<2x32xf32>
    %cst_5 = arith.constant dense<0.000000e+00> : vector<1x2xf32>
    %5 = tpu.matmul %3, %4, %cst_5 {dimension_numbers = #tpu.dot_dimension_numbers<[1], [1], [0], [0], [0, 0, 1, 0], [], []>, precision = #tpu.contract_precision<fp32>} : vector<1x32xf32>, vector<2x32xf32>, vector<1x2xf32> -> vector<1x2xf32>
    %cst_6 = arith.constant 0.000000e+00 : f32
    %6 = vector.broadcast %cst_6 : f32 to vector<1x2xf32>
    %7 = arith.cmpf oge, %5, %6 : vector<1x2xf32>
    %cst_7 = arith.constant 0.00999999977 : f32
    %8 = vector.broadcast %cst_7 : f32 to vector<1x2xf32>
    %9 = arith.mulf %8, %5 : vector<1x2xf32>
    %10 = arith.select %7, %5, %9 : vector<1x2xi1>, vector<1x2xf32>
    %c0_8 = arith.constant 0 : index
    %c0_9 = arith.constant 0 : index
    %11 = vector.load %arg3[%c0_8, %c0_9] : memref<2x32xf32, #tpu.memory_space<vmem>>, vector<2x32xf32>
    %cst_10 = arith.constant dense<0.000000e+00> : vector<1x32xf32>
    %12 = tpu.matmul %10, %11, %cst_10 {dimension_numbers = #tpu.dot_dimension_numbers<[1], [0], [0], [1], [0, 0, 1, 1], [], []>, precision = #tpu.contract_precision<fp32>} : vector<1x2xf32>, vector<2x32xf32>, vector<1x32xf32> -> vector<1x32xf32>
    %13 = arith.negf %12 : vector<1x32xf32>
    %14 = math.exp %13 : vector<1x32xf32>
    %cst_11 = arith.constant 1.000000e+00 : f32
    %15 = vector.broadcast %cst_11 : f32 to vector<1x32xf32>
    %16 = arith.addf %15, %14 : vector<1x32xf32>
    %17 = arith.divf %15, %16 : vector<1x32xf32>
    %c0_12 = arith.constant 0 : index
    %c0_13 = arith.constant 0 : index
    %c0_14 = arith.constant 0 : index
    %18 = vector.load %arg1[%c0_12, %c0_13, %c0_14] : memref<1x32x256xf32, #tpu.memory_space<vmem>>, vector<1x32x256xf32>
    %19 = vector.shape_cast %17 : vector<1x32xf32> to vector<1x32x1xf32>
    %20 = vector.broadcast %19 : vector<1x32x1xf32> to vector<1x32x256xf32>
    %21 = arith.mulf %18, %20 : vector<1x32x256xf32>
    %c0_15 = arith.constant 0 : index
    %c0_16 = arith.constant 0 : index
    %c0_17 = arith.constant 0 : index
    %22 = vector.load %arg4[%c0_15, %c0_16, %c0_17] : memref<1x32x256xf32, #tpu.memory_space<vmem>>, vector<1x32x256xf32>
    tpu.vector_store %arg4[%c0_15, %c0_16, %c0_17], %21 {strides = array<i32>} : memref<1x32x256xf32, #tpu.memory_space<vmem>>, vector<1x32x256xf32>,
    return
  }
  func.func @transform_0(%arg0: i32) -> (i32, i32, i32) {
    %c0_i32 = arith.constant 0 : i32
    %c0_i32_0 = arith.constant 0 : i32
    %c0_i32_1 = arith.constant 0 : i32
    return %arg0, %c0_i32, %c0_i32_0 : i32, i32, i32
  }
  func.func @transform_1(%arg0: i32) -> (i32, i32) {
    %c0_i32 = arith.constant 0 : i32
    %c0_i32_0 = arith.constant 0 : i32
    %c0_i32_1 = arith.constant 0 : i32
    return %c0_i32, %c0_i32_0 : i32, i32
  }
  func.func @transform_2(%arg0: i32) -> (i32, i32) {
    %c0_i32 = arith.constant 0 : i32
    %c0_i32_0 = arith.constant 0 : i32
    %c0_i32_1 = arith.constant 0 : i32
    return %c0_i32, %c0_i32_0 : i32, i32
  }
  func.func @transform_3(%arg0: i32) -> (i32, i32, i32) {
    %c0_i32 = arith.constant 0 : i32
    %c0_i32_0 = arith.constant 0 : i32
    %c0_i32_1 = arith.constant 0 : i32
    return %arg0, %c0_i32, %c0_i32_0 : i32, i32, i32
  }
}

</mosaic_0001>

<bundles_post_ra>
// kernel: tpu_custom_call.1
= control target key start
LH: loop header
LB: loop body
LE: loop exit
PB: predicated region body
PF: predicated region fallthrough
CT: control target
= control target key end

     0   :  { %8 = vsyncpa [#allocation3], 0  ;;  %s1835_s0 = inlined_call_operand.hbm [shape: f32[2,32,256], index: 0, kind: input, shape index: {}]   ;;  %s1836_s1 = inlined_call_operand.vmem [shape: f32[2,32], index: 1, kind: input, shape index: {}]   ;;  %s1837_s2 = inlined_call_operand.vmem [shape: f32[2,32], index: 2, kind: input, shape index: {}]   ;;  %s1838_s3 = inlined_call_operand.hbm [shape: f32[2,32,256], index: 3, kind: output, shape index: {}]  }
   0x1   :  { %10 = vsyncpa [#allocation3 + $0x1], 0 }
   0x2   :  { %11 = vsyncpa [#allocation4], 0 }
   0x3   :  { %13 = vsyncpa [#allocation4 + $0x1], 0  ;;  %s1586_s12 = smov 0   ;;  %s1588_s13 = smov 0  }
   0x4   :  { %s1590_s14 = smov 0   ;;  %s1592_s15 = smov 0  }
   0x5 LB: > { %s1607_s16 = sadd.s32 4294967295, %s1556_s15   ;;  %s1283_s17 = sadd.s32 4294967294, %s1556_s15   ;;  %s1556_s15 = sphi %s1592_s15, %s1851_s15   ;;  %s1552_s14 = sphi %s1590_s14, %s1850_s14   ;;  %s1548_s13 = sphi %s1588_s13, %s1849_s13   ;;  %s1544_s12 = sphi %s1586_s12, %s1848_s12  }
   0x6   : > { %s1611_s18 = sadd.s32 1, %s1556_s15   ;;  %s26_s19 = sadd.s32 1, %s1552_s14 }
   0x7   : > { %s23_s20 = ssub.s32 %s1556_s15, %s1611_s18  ;;  %p33_p0 = scmp.ne.s32.totalorder %s1552_s14, %s1548_s13 }
   0x8   : > { %p24_p1 = scmp.eq.s32.totalorder %s23_s20, 0  ;;  %p34_p2 = scmp.eq.s32.totalorder %s1556_s15, 0 }
   0x9   : > { %p39_p3 = scmp.ne.s32.totalorder %s1548_s13, %s1544_s12  ;;  %p40_p4 = scmp.eq.s32.totalorder %s1607_s16, 0 }
   0xa   : > { %s1623_s21 = scalar_select %p24_p1, %s1552_s14, %s26_s19  }
   0xb   : > { %p1625_p5 = por %p34_p2, %p33_p0  ;;  %p1629_p6 = por %p40_p4, %p39_p3 }
   0xc   : > { %p105_p7 = scmp.eq.s32.totalorder %s1607_s16, 1  ;;  %p111_p8 = scmp.eq.s32.totalorder %s1283_s17, 1 }
   0xd   : > { %p1416_p10 = scmp.lt.s32.totalorder %s1556_s15, 2  ;;  %s137_s26 = sand.u32 1, %s1552_s14  }
   0xe   : > { %p1636_p11 = por %p105_p7, %p33_p0  ;;  %p1640_p12 = por %p111_p8, %p39_p3 }
   0xf   : > { %s1298_s27 = sshll.u32 %s1556_s15, 10  ;;  %s1286_s28 = sshll.u32 %s137_s26, 6 }
  0x10   : > { %s1842_s24 = scalar_select %p1636_p11, 1, 0 }
  0x11   : > { %s1843_s25 = scalar_select %p1640_p12, 1, 0 }
  0x12   : > { %s1649_s4 = scalar_lea.hbm %s1835_s0, %s1298_s27  ;;  %s141_s5 = scalar_lea.vmem [#allocation2], %s1286_s28 }
  0x13   : > { %s148_s6 = sshll.u32 %s141_s5, 4  ;;  %p1653_p13 = pnand %p1416_p10, %p1625_p5  ;;  %s1657_s6 = int_to_ptr.vmem [resolvable:$true] %s148_s6 }
  0x14   : > { %s1659_s8 = scalar_lea.sflag [#allocation3], %s137_s26  ;;  %s1460_s9 = scalar_lea.hbm %s1649_s4, 1024 }
  0x15   : > { %p1461_p0 = scmp.ne.s32.totalorder %s1649_s4, %s1460_s9  ;;  %p1462_p1 = pneg %p1653_p13 }
  0x16   : > { %s1465_s17 = scalar_lea.hbm %s1835_s0, 2048  ;;  %p1466_p4 = scmp.lt.u32.totalorder %s1649_s4, %s1835_s0 }
  0x17   : > { %p1463_p2 = pnand %p1462_p1, %p1461_p0  ;;  %p1467_p5 = scmp.lt.u32.totalorder %s1465_s17, %s1460_s9 }
  0x18   : > { %p1469_p8 = scmp.lt.u32.totalorder %s1460_s9, %s1649_s4 }
  0x19   : > { %p1464_p3 = pneg %p1463_p2  ;;  %p1468_p7 = por %p1467_p5, %p1466_p4 }
  0x1b   : > { %p1470_p10 = por %p1469_p8, %p1468_p7 }
  0x1d   : > { %p1471_p9 = pnand %p1470_p10, %p1464_p3 }
  0x1f   : > { %1474 = shalt.err (!%p1471_p9)
}
  0x20   : > { %s1475_s22 = scalar_lea.vmem %s1657_s6, 1024  ;;  %s1558_s26 = smov [#allocation2]  }
  0x21   : > { %p1476_p0 = scmp.ne.s32.totalorder %s1657_s6, %s1475_s22  ;;  %s1480_s27 = sshll.u32 %s1558_s26, 4  ;;  %s1481_s27 = int_to_ptr.vmem [resolvable:$false] %s1480_s27 }
  0x22   : > { %s1482_s28 = scalar_lea.vmem %s1481_s27, 2048  ;;  %p1483_p11 = scmp.lt.s32.totalorder %s1657_s6, %s1481_s27 }
  0x23   : > { %p1478_p2 = pnand %p1476_p0, %p1462_p1  ;;  %p1484_p4 = scmp.lt.s32.totalorder %s1482_s28, %s1475_s22 }
  0x25   : > { %p1479_p12 = pneg %p1478_p2  ;;  %p1485_p5 = por %p1484_p4, %p1483_p11 }
  0x27   : > { %p1486_p7 = pnand %p1485_p5, %p1479_p12 }
  0x29   : > { %1489 = shalt.err (!%p1486_p7)
}
  0x2a   : > { %s1559_s29 = smov 256   ;;  %s1560_s30 = smov 16  }
  0x2b   : > { %1411 = dma.hbm_to_vmem [thread:$0]  (!%p1653_p13), %s1649_s4, 1024, %s1657_s6, %s1659_s8, %s1559_s29, %s1559_s29, %s1560_s30  }
  0x2c   : > { %p1289_p9 = scmp.ge.s32.totalorder %s1556_s15, 1  ;;  %p156_p1 = scmp.lt.s32.totalorder %s1556_s15, 3 }
  0x2e   : > { %p157_p3 = pnand %p1289_p9, %p156_p1 }
  0x2f   : > { %s1690_s5 = sand.u32 (!%p157_p3), 1, %s1548_s13  }
  0x30   : > { %160 = sbr.rel (%p157_p3) target bundleno = 909 (0x38d), region = 32  ;;  %s1290_s9 = sshll.u32 (!%p157_p3), %s1690_s5, 6 }
  0x31   : > { %s163_s10 = scalar_lea.sflag (!%p157_p3), [#allocation3], %s1690_s5  ;;  %s166_s11 = scalar_lea.vmem (!%p157_p3), [#allocation2], %s1290_s9 }
  0x37   : > { %1535 = dma.done.wait (%p1629_p6), %s163_s10, 1024  }
  0x38   : > { %1537 = vsyncadd (%p1629_p6), %s163_s10, 4294966272  ;;  %v1700_v0 = vld [vmem:[%s166_s11] sm:$0xff]  ;;  %v1702_v1 = vld [vmem:[%s166_s11 + $0x8] sm:$0xff]  ;;  %vm245_vm0 = vcmask 261120   ;;  %v1561_v13 = vmov 0.0   ;;  %vm1562_vm1 = vmmov 0   ;;  %v218_v16 = vlaneseq }
  0x39   : > { %v1704_v2 = vld [vmem:[%s166_s11 + $0x20] sm:$0xff]  ;;  %v197_v3 = vadd.f32 %v1702_v1, %v1700_v0  ;;  %v1708_v4 = vld [vmem:[%s166_s11 + $0x28] sm:$0xff]  ;;  %v1710_v5 = vld [vmem:[%s166_s11 + $0x10] sm:$0xff]  ;;  %1324 = vmatprep.subr.mxu0 %v1561_v13  ;;  %1326 = vmatprep.mubr.msk.f32.mxu0 %vm1562_vm1, %v1561_v13  ;;  %vm229_vm2 = vcmask 130112   ;;  %vm236_vm3 = vcmask 195712   ;;  %vm243_vm4 = vcmask 261312  }
  0x3a   : > { %v1712_v6 = vld [vmem:[%s166_s11 + $0x18] sm:$0xff]  ;;  %v203_v7 = vadd.f32 %v1708_v4, %v1704_v2  ;;  %v1716_v8 = vld [vmem:[%s166_s11 + $0x30] sm:$0xff]  ;;  %v213_v12 = vld [vmem:[%s1836_s1] sm:$0x3]  ;;  %1354 = vmatprep.subr.mxu1 %v1561_v13  ;;  %1356 = vmatprep.mubr.msk.f32.mxu1 %vm1562_vm1, %v1561_v13  ;;  %v219_v17 = vand.u32 127, %v218_v16  ;;  %v1735_v18 = vshrl.u32 %v218_v16, 7 }
  0x3b   : > { %v1718_v9 = vld [vmem:[%s166_s11 + $0x38] sm:$0xff]  ;;  %198 = vadd.xlane.f32.xlu0 %v197_v3  ;;  %v200_v10 = vadd.f32 %v1712_v6, %v1710_v5  ;;  %v249_v14 = vsel %vm245_vm0, %v213_v12, 0  ;;  %v700_v51 = vld [vmem:[%s1837_s2] sm:$0x3]  ;;  %vm705_vm5 = vcmask 1041408   ;;  %vm701_vm7 = vcmask 15360  }
  0x3c   : > { %204 = vadd.xlane.f32.xlu1 %v203_v7  ;;  %v206_v11 = vadd.f32 %v1718_v9, %v1716_v8  ;;  %v252_v15 = vand.u32 4294901760, %v249_v14  ;;  %v224_v19 = vadd.s32 4294967288, %v219_v17  ;;  %v231_v21 = vadd.s32 4294967280, %v219_v17  ;;  %s188_s8 = scalar_lea.vmem [#allocation5], %s1290_s9  ;;  %s1299_s19 = sshll.u32 %s1607_s16, 10 }
  0x3d   : > { %v238_v22 = vadd.s32 4294967272, %v219_v17  ;;  %v222_v24 = vsub.s32 %v219_v17, %v1735_v18  ;;  %v707_v52 = vsel %vm705_vm5, %v700_v51, 0  ;;  %s1210_s17 = sshll.u32 %s188_s8, 4  ;;  %s1789_s26 = scalar_lea.hbm %s1838_s3, %s1299_s19  ;;  %s1784_s17 = int_to_ptr.vmem [resolvable:$true] %s1210_s17 }
  0x3e   : > { %1325 = vmatpush3.xpose.msra.mxu0 %v252_v15  ;;  %v227_v26 = vsub.s32 %v224_v19, %v1735_v18  ;;  %v234_v27 = vsub.s32 %v231_v21, %v1735_v18  ;;  %v329_v38 = vsub.f32 %v249_v14, %v252_v15  ;;  %v710_v53 = vand.u32 4294901760, %v707_v52  ;;  %s1197_s16 = scalar_lea.sflag [#allocation4], %s1690_s5  ;;  %s1490_s27 = scalar_lea.vmem %s1784_s17, 1024 }
  0x3f   : > { %201 = vadd.xlane.f32.xlu0 %v200_v10  ;;  %1329 = vmatprep.subr.mxu0 %v1561_v13  ;;  %v241_v30 = vsub.s32 %v238_v22, %v1735_v18  ;;  %v1163_v19 = vsub.s32 0, %v1735_v18  ;;  %p1491_p6 = scmp.ne.s32.totalorder %s1784_s17, %s1490_s27  ;;  %p1845_p11 = scmp.ne.s32.totalorder %s1842_s24, 0 }
  0x40   : > { %207 = vadd.xlane.f32.xlu1 %v206_v11  ;;  %v330_v43 = vand.u32 4294901760, %v329_v38  ;;  %1355 = vmatpush3.msra.mxu1 %v710_v53  ;;  %v787_v55 = vsub.f32 %v707_v52, %v710_v53  ;;  %s1563_s28 = smov [#allocation5]  }
  0x41   : > { %1359 = vmatprep.subr.mxu1 %v1561_v13  ;;  %p1492_p12 = pnand %p1491_p6, %p1845_p11  ;;  %s1494_s29 = sshll.u32 %s1563_s28, 4  ;;  %s1495_s29 = int_to_ptr.vmem [resolvable:$false] %s1494_s29 }
  0x42   : > { %v331_v46 = vsub.f32 %v329_v38, %v330_v43  ;;  %v788_v60 = vand.u32 4294901760, %v787_v55  ;;  %s1496_s30 = scalar_lea.vmem %s1495_s29, 2048  ;;  %p1497_p8 = scmp.lt.s32.totalorder %s1784_s17, %s1495_s29 }
  0x43   : > { %p1493_p13 = pneg %p1492_p12  ;;  %p1498_p10 = scmp.lt.s32.totalorder %s1496_s30, %s1490_s27 }
  0x44   : > { %v332_v49 = vand.u32 4294901760, %v331_v46  ;;  %v789_v63 = vsub.f32 %v787_v55, %v788_v60 }
  0x45   : > { %p1499_p0 = por %p1498_p10, %p1497_p8 }
  0x46   : > { %v790_v10 = vand.u32 4294901760, %v789_v63 }
  0x47   : > { %p1500_p2 = pnand %p1499_p0, %p1493_p13 }
  0xc8   : > { %v199_v20 = vpop.xlane.xlu0 %198 }
  0xc9   : > { %v205_v23 = vpop.xlane.xlu1 %204  ;;  %v209_v25 = vmul.f32 0.00390625, %v199_v20 }
  0xca   : > { %v211_v28 = vmul.f32 0.00390625, %v205_v23 }
  0xcb   : > { %v223_v34 = vrot.slane %v209_v25, %v222_v24 }
  0xcc   : > { %v202_v29 = vpop.xlane.xlu0 %201  ;;  %v235_v36 = vrot.slane %v211_v28, %v234_v27 }
  0xcd   : > { %v210_v31 = vmul.f32 0.00390625, %v202_v29  ;;  %v208_v32 = vpop.xlane.xlu1 %207 }
  0xce   : > { %v212_v33 = vmul.f32 0.00390625, %v208_v32 }
  0xcf   : > { %v228_v35 = vrot.slane %v210_v31, %v227_v26 }
  0xd0   : > { %v242_v37 = vrot.slane %v212_v33, %v241_v30 }
  0xd1   : > { %v230_v39 = vsel %vm229_vm2, %v228_v35, %v223_v34 }
  0xd2   : > { %v237_v40 = vsel %vm236_vm3, %v235_v36, %v230_v39 }
  0xd3   : > { %v244_v41 = vsel %vm243_vm4, %v242_v37, %v237_v40 }
  0xd4   : > { %v246_v42 = vsel %vm245_vm0, %v244_v41, 0 }
  0xd5   : > { %v317_v44 = vand.u32 4294901760, %v246_v42 }
  0xd7   : > { %v318_v45 = vsub.f32 %v246_v42, %v317_v44 }
  0xd9   : > { %v319_v47 = vand.u32 4294901760, %v318_v45 }
  0xdb   : > { %v320_v48 = vsub.f32 %v318_v45, %v319_v47 }
  0xdd   : > { %v321_v50 = vand.u32 4294901760, %v320_v48 }
  0xdf   : > { %1327 = vmatmul.mubr.f32.vlgmr.msra.gmra.mrb[0].mxu0 %v321_v50 }
  0xe0   : > { %1330 = vmatpush3.xpose.msra.mxu0 %v332_v49  ;;  %1331 = vmatprep.mubr.msk.f32.mxu0 %vm1562_vm1, %v1561_v13 }
  0xe1   : > { %1334 = vmatprep.subr.mxu0 %v1561_v13 }
  0xe7   : > { %1332 = vmatmul.mubr.f32.vlgmr.msra.gmra.mrb[0].mxu0 %v317_v44 }
  0xe8   : > { %1335 = vmatpush3.xpose.msra.mxu0 %v329_v38  ;;  %1336 = vmatprep.mubr.msk.f32.mxu0 %vm1562_vm1, %v1561_v13 }
  0xe9   : > { %1339 = vmatprep.subr.mxu0 %v1561_v13 }
  0xef   : > { %1337 = vmatmul.mubr.f32.vlgmr.msra.gmra.mrb[0].mxu0 %v318_v45 }
  0xf0   : > { %1340 = vmatpush3.xpose.msra.mxu0 %v252_v15  ;;  %1341 = vmatprep.mubr.msk.f32.mxu0 %vm1562_vm1, %v1561_v13 }
  0xf1   : > { %1344 = vmatprep.subr.mxu0 %v1561_v13 }
  0xf7   : > { %1342 = vmatmul.mubr.f32.vlgmr.msra.gmra.mrb[0].mxu0 %v319_v47 }
  0xf8   : > { %1345 = vmatpush3.xpose.msra.mxu0 %v330_v43  ;;  %1346 = vmatprep.mubr.msk.f32.mxu0 %vm1562_vm1, %v1561_v13 }
  0xf9   : > { %1349 = vmatprep.subr.mxu0 %v1561_v13 }
  0xff   : > { %1347 = vmatmul.mubr.f32.vlgmr.msra.gmra.mrb[0].mxu0 %v317_v44 }
 0x100   : > { %1350 = vmatpush3.xpose.msra.mxu0 %v252_v15  ;;  %1351 = vmatprep.mubr.msk.f32.mxu0 %vm1562_vm1, %v1561_v13 }
 0x107   : > { %1352 = vmatmul.mubr.f32.vlgmr.msra.gmra.mrb[0].mxu0 %v317_v44 }
 0x1da   : > { %v693_v54 = vpop.f32.mrb[0].mxu0 }
 0x1db   : > { %vm697_vm6 = vcmp.ge.f32.partialorder %v693_v54, 0.0  ;;  %v698_v56 = vmul.f32 0.01, %v693_v54  ;;  %v1353_v57 = vpop.f32.mrb[1].mxu0 }
 0x1dd   : > { %v699_v58 = vsel %vm697_vm6, %v693_v54, %v698_v56 }
 0x1de   : > { %v703_v59 = vsel %vm701_vm7, %v699_v58, 0 }
 0x1df   : > { %v775_v61 = vand.u32 4294901760, %v703_v59 }
 0x1e1   : > { %v776_v62 = vsub.f32 %v703_v59, %v775_v61 }
 0x1e3   : > { %v777_v3 = vand.u32 4294901760, %v776_v62 }
 0x1e5   : > { %v778_v7 = vsub.f32 %v776_v62, %v777_v3 }
 0x1e7   : > { %v779_v11 = vand.u32 4294901760, %v778_v7 }
 0x1e9   : > { %1357 = vmatmul.mubr.f32.vlgmr.msra.gmra.mrb[0].mxu1 %v779_v11 }
 0x1ea   : > { %1360 = vmatpush3.msra.mxu1 %v790_v10  ;;  %1361 = vmatprep.mubr.msk.f32.mxu1 %vm1562_vm1, %v1561_v13 }
 0x1eb   : > { %1364 = vmatprep.subr.mxu1 %v1561_v13 }
 0x1f1   : > { %1362 = vmatmul.mubr.f32.vlgmr.msra.gmra.mrb[0].mxu1 %v775_v61 }
 0x1f2   : > { %1365 = vmatpush3.msra.mxu1 %v787_v55  ;;  %1366 = vmatprep.mubr.msk.f32.mxu1 %vm1562_vm1, %v1561_v13 }
 0x1f3   : > { %1369 = vmatprep.subr.mxu1 %v1561_v13 }
 0x1f9   : > { %1367 = vmatmul.mubr.f32.vlgmr.msra.gmra.mrb[0].mxu1 %v776_v62 }
 0x1fa   : > { %1370 = vmatpush3.msra.mxu1 %v710_v53  ;;  %1371 = vmatprep.mubr.msk.f32.mxu1 %vm1562_vm1, %v1561_v13 }
 0x1fb   : > { %1374 = vmatprep.subr.mxu1 %v1561_v13 }
 0x201   : > { %1372 = vmatmul.mubr.f32.vlgmr.msra.gmra.mrb[0].mxu1 %v777_v3 }
 0x202   : > { %1375 = vmatpush3.msra.mxu1 %v788_v60  ;;  %1376 = vmatprep.mubr.msk.f32.mxu1 %vm1562_vm1, %v1561_v13 }
 0x203   : > { %1379 = vmatprep.subr.mxu1 %v1561_v13 }
 0x209   : > { %1377 = vmatmul.mubr.f32.vlgmr.msra.gmra.mrb[0].mxu1 %v775_v61 }
 0x20a   : > { %1380 = vmatpush3.msra.mxu1 %v710_v53  ;;  %1381 = vmatprep.mubr.msk.f32.mxu1 %vm1562_vm1, %v1561_v13 }
 0x211   : > { %1382 = vmatmul.mubr.f32.vlgmr.msra.gmra.mrb[0].mxu1 %v775_v61 }
 0x2e4   : > { %v1151_v12 = vpop.f32.mrb[0].mxu1 }
 0x2e5   : > { %v1292_v14 = vmul.f32 -1.442695, %v1151_v12  ;;  %v1383_v15 = vpop.f32.mrb[1].mxu1 }
 0x2e7   : > { %1456 = vpow2.f32 %v1292_v14 }
 0x2f1   : > { %v1457_v16 = vpop.eup %1456 }
 0x2f2   : > { %v1158_v17 = vadd.f32 1.0, %v1457_v16 }
 0x2f4   : > { %1458 = vrcp.f32 %v1158_v17 }
 0x2fe   : > { %v1459_v20 = vpop.eup %1458 }
 0x2ff   : > { %v1164_v21 = vrot.slane %v1459_v20, %v1163_v19 }
 0x301   : > { %1170 = vbcast.lane.b32.xlu1 %v1164_v21, 264  ;;  %1166 = vbcast.lane.b32.xlu0 %v1164_v21, 256 }
 0x305   : > { %1174 = vbcast.lane.b32.xlu1 %v1164_v21, 272 }
 0x309   : > { %1178 = vbcast.lane.b32.xlu1 %v1164_v21, 280 }
 0x373   : > { %v1171_v22 = vpop.permute.xlu1 %1170  ;;  %v1167_v13 = vpop.permute.xlu0 %1166 }
 0x374   : > { %v1182_v23 = vmul.f32 %v1171_v22, %v1710_v5  ;;  %v1183_v24 = vmul.f32 %v1171_v22, %v1712_v6  ;;  %v1180_v25 = vmul.f32 %v1167_v13, %v1700_v0  ;;  %v1181_v26 = vmul.f32 %v1167_v13, %v1702_v1 }
 0x376   : > { %1190 = vst [vmem:[%s188_s8 + $0x10] sm:$0xff] %v1182_v23  ;;  %1191 = vst [vmem:[%s188_s8 + $0x18] sm:$0xff] %v1183_v24 }
 0x377   : > { %1188 = vst [vmem:[%s188_s8] sm:$0xff] %v1180_v25  ;;  %1189 = vst [vmem:[%s188_s8 + $0x8] sm:$0xff] %v1181_v26  ;;  %v1175_v18 = vpop.permute.xlu1 %1174 }
 0x378   : > { %v1184_v27 = vmul.f32 %v1175_v18, %v1704_v2  ;;  %v1185_v5 = vmul.f32 %v1175_v18, %v1708_v4 }
 0x37a   : > { %1192 = vst [vmem:[%s188_s8 + $0x20] sm:$0xff] %v1184_v27  ;;  %1193 = vst [vmem:[%s188_s8 + $0x28] sm:$0xff] %v1185_v5 }
 0x37b   : > { %v1179_v0 = vpop.permute.xlu1 %1178 }
 0x37c   : > { %v1186_v1 = vmul.f32 %v1179_v0, %v1716_v8  ;;  %v1187_v2 = vmul.f32 %v1179_v0, %v1718_v9 }
 0x37e   : > { %1194 = vst [vmem:[%s188_s8 + $0x30] sm:$0xff] %v1186_v1  ;;  %1195 = vst [vmem:[%s188_s8 + $0x38] sm:$0xff] %v1187_v2 }
 0x37f   : > { %1503 = shalt.err (!%p1500_p2)
}
 0x380   : > { %s1504_s9 = scalar_lea.hbm %s1789_s26, 1024  ;;  %s1508_s23 = scalar_lea.hbm %s1838_s3, 2048 }
 0x381   : > { %p1505_p4 = scmp.ne.s32.totalorder %s1789_s26, %s1504_s9  ;;  %p1509_p9 = scmp.lt.u32.totalorder %s1789_s26, %s1838_s3 }
 0x382   : > { %p1510_p1 = scmp.lt.u32.totalorder %s1508_s23, %s1504_s9  ;;  %p1512_p6 = scmp.lt.u32.totalorder %s1504_s9, %s1789_s26 }
 0x383   : > { %p1506_p5 = pnand %p1505_p4, %p1845_p11 }
 0x384   : > { %p1511_p3 = por %p1510_p1, %p1509_p9 }
 0x385   : > { %p1507_p7 = pneg %p1506_p5 }
 0x386   : > { %p1513_p12 = por %p1512_p6, %p1511_p3 }
 0x388   : > { %p1514_p13 = pnand %p1513_p12, %p1507_p7 }
 0x38a   : > { %1517 = shalt.err (!%p1514_p13)
}
 0x38b   : > { %s1564_s7 = smov 256   ;;  %s1565_s8 = smov 16  }
 0x38c   : > { %1406 = dma.vmem_to_hbm [thread:$0]  (%p1845_p11), %s1784_s17, 1024, %s1789_s26, %s1197_s16, %s1564_s7, %s1564_s7, %s1565_s8  }
 0x38d PF: > { %s1225_s19 = sand.u32 1, %s1544_s12   ;;  %p1846_p8 = scmp.ne.s32.totalorder %s1843_s25, 0 }
 0x38e   : > { %p1847_p10 = scmp.ge.s32.totalorder %s1556_s15, 2  ;;  %s1226_s20 = scalar_lea.sflag [#allocation4], %s1225_s19 }
 0x390   : > { %p1413_p0 = pnand %p1847_p10, %p1846_p8 }
 0x392   : > { %1539 = dma.done.wait (!%p1413_p0), %s1226_s20, 1024  }
 0x393   : > { %1541 = vsyncadd (!%p1413_p0), %s1226_s20, 4294966272  ;;  %p16_p2 = scmp.ge.s32.totalorder %s1611_s18, 4   ;;  %s1848_s12 = smov %s1548_s13 }
 0x394   : > { %s1849_s13 = smov %s1552_s14  ;;  %s1850_s14 = smov %s1623_s21 }
 0x395   : > { %s1851_s15 = smov %s1611_s18  ;;  %18 = sbr.rel (!%p16_p2) target bundleno = 5 (0x5), region = 77 }
 0x39c   :  { %1231 = vsyncpa [#allocation3], 1 }
 0x39d   :  { %1233 = vsyncpa [#allocation3 + $0x1], 1 }
 0x39e   :  { %1234 = vsyncpa [#allocation4], 1 }
 0x39f   :  { %1236 = vsyncpa [#allocation4 + $0x1], 1 }

</bundles_post_ra>
